<compile_context>
chip_gen: v6e
topology: v6e:2x2x1
jax: 0.10.0
libtpu: 0.0.40
codegen_flags: <defaults>
</compile_context>

<pallas_src>
import math

import numpy as np
import jax
import jax.numpy as jnp
from jax.experimental import pallas as pl
from jax.experimental.pallas import tpu as pltpu


def _pick_2d_shape(size):
    """Factor `size` into (rows, cols) for chunked contiguous HBM->HBM DMA.

    Lane density is irrelevant here (no vregs/VMEM involved); we only need a
    2D view whose leading axis can be split into contiguous chunks.
    """
    if size <= 0:
        return 1, 1
    if size % 128 == 0:
        return size // 128, 128
    k = 1
    for d in range(2, min(size, 1024) + 1):
        if size % d == 0:
            k = d
    return size // k, k


def _chunk_bounds(rows, total_bytes, max_chunks=8, min_chunk_bytes=512 * 1024):
    """Static (start_row, num_rows) chunks along the row axis.

    Several in-flight DMAs improve HBM->HBM issue concurrency on large
    tensors; a single DMA suffices for small ones.
    """
    nc = int(max(1, min(max_chunks, rows, total_bytes // min_chunk_bytes)))
    base, rem = divmod(rows, nc)
    bounds, start = [], 0
    for c in range(nc):
        sz = base + (1 if c < rem else 0)
        if sz:
            bounds.append((start, sz))
            start += sz
    return bounds


def _make_select_dma_kernel(n, chunk_bounds):
    """Kernel: copy the idx-th HBM input directly to the HBM output via DMA."""

    def kernel(idx_ref, *refs):
        x_refs = refs[:n]          # raw HBM refs (memory_space=pl.ANY)
        out_ref = refs[n]          # raw HBM output ref
        sem = refs[n + 1]          # DMA semaphores, one per chunk
        idx = idx_ref[0]
        for j in range(n):
            @pl.when(idx == j)
            def _copy(j=j):
                copies = []
                for c, (start, nrows) in enumerate(chunk_bounds):
                    cp = pltpu.make_async_copy(
                        x_refs[j].at[pl.ds(start, nrows), :],
                        out_ref.at[pl.ds(start, nrows), :],
                        sem.at[c],
                    )
                    cp.start()
                    copies.append(cp)
                for cp in copies:
                    cp.wait()

    return kernel


def index_select_dynamic(xs, index):
    """xs: list of same-shape/dtype arrays; index: traced int scalar.

    Returns xs[index] with exactly 2*size bytes of HBM traffic via direct
    HBM->HBM DMA (no VMEM round trip, no pre-stack).
    """
    n = len(xs)
    item_shape = xs[0].shape
    dtype = xs[0].dtype
    size = math.prod(item_shape) if item_shape else 1
    itemsize = jnp.dtype(dtype).itemsize

    r, k = _pick_2d_shape(size)
    bounds = _chunk_bounds(r, size * itemsize)

    # Python-style negative indexing, normalized outside the kernel.
    idx = jnp.asarray(index, jnp.int32)
    idx = jnp.where(idx < 0, idx + n, idx)
    idx_arr = idx.reshape((1,))

    # Contiguous reshapes are layout no-ops; they just give DMA a chunkable
    # 2D view of each tensor.
    xs2d = [x.reshape(r, k) for x in xs]

    out = pl.pallas_call(
        _make_select_dma_kernel(n, bounds),
        out_shape=jax.ShapeDtypeStruct((r, k), dtype),
        grid_spec=pltpu.PrefetchScalarGridSpec(
            num_scalar_prefetch=1,
            grid=(1,),
            in_specs=[pl.BlockSpec(memory_space=pl.ANY) for _ in range(n)],
            out_specs=pl.BlockSpec(memory_space=pl.ANY),
            scratch_shapes=[pltpu.SemaphoreType.DMA((len(bounds),))],
        ),
        # Accurate now: only the selected tensor is read and written once.
        cost_estimate=pl.CostEstimate(
            flops=0, transcendentals=0, bytes_accessed=2 * size * itemsize),
        # Further (minor) v7x option: shard chunks across the 2 TensorCores
        # via a parallel grid axis; single-core DMA issue is already near
        # HBM roofline, so we keep the simpler single-invocation form.
    )(idx_arr, *xs2d)

    return out.reshape(item_shape)


def index_forward(xs, index):
    """Pallas equivalent of ultralytics Index.forward: return xs[index]."""
    xs = list(xs)
    if isinstance(index, (int, np.integer)):
        # The ultralytics module stores a static Python int: resolve the
        # selection at trace time — no kernel, no HBM traffic at all.
        return xs[index]

    # Dynamic (traced) index: needs a homogeneous list so the output
    # shape/dtype is static.
    first = xs[0]
    if not all(x.shape == first.shape and x.dtype == first.dtype for x in xs):
        # TODO(synk): heterogeneous lists with a traced index have no static
        # output shape, so there is no Pallas (or JAX) formulation; use a
        # static Python index for that case.
        raise ValueError(
            "Dynamic index over a heterogeneous tensor list is not "
            "expressible; pass a static Python int index instead.")
    return index_select_dynamic(xs, index)


def index_ref(xs, index):
    """Pure-Python reference mirroring the PyTorch module."""
    return xs[int(index)]


if __name__ == "__main__":
    B, C, H, W = 2, 4, 16, 16
    N = 3          # number of tensors in the input list
    INDEX = 1      # module's self.index

    key = jax.random.PRNGKey(0)
    keys = jax.random.split(key, N)
    xs = [jax.random.normal(k, (B, C, H, W), dtype=jnp.float32) for k in keys]

    # Static-index path (the module's actual semantics): trace-time selection.
    out_static = index_forward(xs, INDEX)

    # Dynamic-index path: exercises the Pallas HBM->HBM DMA select kernel.
    out_kernel = jax.block_until_ready(index_forward(xs, jnp.int32(INDEX)))

    # Negative dynamic index (python-style) through the kernel as well.
    out_neg = jax.block_until_ready(index_forward(xs, jnp.int32(-1)))

    ref = index_ref(xs, INDEX)
    assert out_kernel.shape == ref.shape
    assert jnp.array_equal(out_static, ref), "static path mismatch"
    assert jnp.array_equal(out_kernel, ref), "kernel mismatch vs reference"
    assert jnp.array_equal(out_neg, xs[-1]), "negative-index mismatch"

    print("KERNEL_OK")
</pallas_src>

<mosaic_0001>
module attributes {stable_mosaic.version = 11 : i64} {
  func.func @kernel(%arg0: i32, %arg1: memref<1xi32, #tpu.memory_space<smem>>, %arg2: memref<16x128xf32, #tpu.memory_space<any>>, %arg3: memref<16x128xf32, #tpu.memory_space<any>>, %arg4: memref<16x128xf32, #tpu.memory_space<any>>, %arg5: memref<16x128xf32, #tpu.memory_space<any>>, %arg6: memref<1x!tpu.dma_semaphore, #tpu.memory_space<semaphore_mem>>) attributes {dimension_semantics = [#tpu.dimension_semantics<arbitrary>], iteration_bounds = array<i64: 1>, scalar_prefetch = 1 : i64, scratch_operands = 1 : i64, tpu.core_type = #tpu.core_type<tc>, window_params = [{}, {}, {}, {}]} {
    %c0 = arith.constant 0 : index
    %0 = memref.load %arg1[%c0] : memref<1xi32, #tpu.memory_space<smem>>
    %c0_i32 = arith.constant 0 : i32
    %1 = arith.cmpi eq, %0, %c0_i32 : i32
    %2 = arith.extui %1 : i1 to i32
    %c0_i32_0 = arith.constant 0 : i32
    %3 = arith.cmpi ne, %2, %c0_i32_0 : i32
    scf.if %3 {
      %c0_i32_3 = arith.constant 0 : i32
      %c0_i32_4 = arith.constant 0 : i32
      %c0_i32_5 = arith.constant 0 : i32
      %10 = tpu.memref_slice %arg2[%c0_i32_4, %c0_i32_5] : memref<16x128xf32, #tpu.memory_space<any>> -> memref<16x128xf32, #tpu.memory_space<any>>
      %c0_i32_6 = arith.constant 0 : i32
      %c0_i32_7 = arith.constant 0 : i32
      %11 = tpu.memref_slice %arg5[%c0_i32_6, %c0_i32_7] : memref<16x128xf32, #tpu.memory_space<any>> -> memref<16x128xf32, #tpu.memory_space<any>>
      %12 = tpu.memref_slice %arg6[%c0_i32_3] : memref<1x!tpu.dma_semaphore, #tpu.memory_space<semaphore_mem>> -> memref<1x!tpu.dma_semaphore, #tpu.memory_space<semaphore_mem>>
      %13 = tpu.memref_squeeze %12 : memref<1x!tpu.dma_semaphore, #tpu.memory_space<semaphore_mem>> -> memref<!tpu.dma_semaphore, #tpu.memory_space<semaphore_mem>>
      tpu.enqueue_dma source(%10 : memref<16x128xf32, #tpu.memory_space<any>>) target(%11 : memref<16x128xf32, #tpu.memory_space<any>>) target_semaphore(%13 : memref<!tpu.dma_semaphore, #tpu.memory_space<semaphore_mem>>)
      %c0_i32_8 = arith.constant 0 : i32
      %c0_i32_9 = arith.constant 0 : i32
      %c0_i32_10 = arith.constant 0 : i32
      %14 = tpu.memref_slice %arg2[%c0_i32_9, %c0_i32_10] : memref<16x128xf32, #tpu.memory_space<any>> -> memref<16x128xf32, #tpu.memory_space<any>>
      %c0_i32_11 = arith.constant 0 : i32
      %c0_i32_12 = arith.constant 0 : i32
      %15 = tpu.memref_slice %arg5[%c0_i32_11, %c0_i32_12] : memref<16x128xf32, #tpu.memory_space<any>> -> memref<16x128xf32, #tpu.memory_space<any>>
      %16 = tpu.memref_slice %arg6[%c0_i32_8] : memref<1x!tpu.dma_semaphore, #tpu.memory_space<semaphore_mem>> -> memref<1x!tpu.dma_semaphore, #tpu.memory_space<semaphore_mem>>
      %17 = tpu.memref_squeeze %16 : memref<1x!tpu.dma_semaphore, #tpu.memory_space<semaphore_mem>> -> memref<!tpu.dma_semaphore, #tpu.memory_space<semaphore_mem>>
      tpu.wait_dma2 semaphore(%17 : memref<!tpu.dma_semaphore, #tpu.memory_space<semaphore_mem>>) src(%14 : memref<16x128xf32, #tpu.memory_space<any>>) dst(%15 : memref<16x128xf32, #tpu.memory_space<any>>)
    } else {
    }
    %c1_i32 = arith.constant 1 : i32
    %4 = arith.cmpi eq, %0, %c1_i32 : i32
    %5 = arith.extui %4 : i1 to i32
    %c0_i32_1 = arith.constant 0 : i32
    %6 = arith.cmpi ne, %5, %c0_i32_1 : i32
    scf.if %6 {
      %c0_i32_3 = arith.constant 0 : i32
      %c0_i32_4 = arith.constant 0 : i32
      %c0_i32_5 = arith.constant 0 : i32
      %10 = tpu.memref_slice %arg3[%c0_i32_4, %c0_i32_5] : memref<16x128xf32, #tpu.memory_space<any>> -> memref<16x128xf32, #tpu.memory_space<any>>
      %c0_i32_6 = arith.constant 0 : i32
      %c0_i32_7 = arith.constant 0 : i32
      %11 = tpu.memref_slice %arg5[%c0_i32_6, %c0_i32_7] : memref<16x128xf32, #tpu.memory_space<any>> -> memref<16x128xf32, #tpu.memory_space<any>>
      %12 = tpu.memref_slice %arg6[%c0_i32_3] : memref<1x!tpu.dma_semaphore, #tpu.memory_space<semaphore_mem>> -> memref<1x!tpu.dma_semaphore, #tpu.memory_space<semaphore_mem>>
      %13 = tpu.memref_squeeze %12 : memref<1x!tpu.dma_semaphore, #tpu.memory_space<semaphore_mem>> -> memref<!tpu.dma_semaphore, #tpu.memory_space<semaphore_mem>>
      tpu.enqueue_dma source(%10 : memref<16x128xf32, #tpu.memory_space<any>>) target(%11 : memref<16x128xf32, #tpu.memory_space<any>>) target_semaphore(%13 : memref<!tpu.dma_semaphore, #tpu.memory_space<semaphore_mem>>)
      %c0_i32_8 = arith.constant 0 : i32
      %c0_i32_9 = arith.constant 0 : i32
      %c0_i32_10 = arith.constant 0 : i32
      %14 = tpu.memref_slice %arg3[%c0_i32_9, %c0_i32_10] : memref<16x128xf32, #tpu.memory_space<any>> -> memref<16x128xf32, #tpu.memory_space<any>>
      %c0_i32_11 = arith.constant 0 : i32
      %c0_i32_12 = arith.constant 0 : i32
      %15 = tpu.memref_slice %arg5[%c0_i32_11, %c0_i32_12] : memref<16x128xf32, #tpu.memory_space<any>> -> memref<16x128xf32, #tpu.memory_space<any>>
      %16 = tpu.memref_slice %arg6[%c0_i32_8] : memref<1x!tpu.dma_semaphore, #tpu.memory_space<semaphore_mem>> -> memref<1x!tpu.dma_semaphore, #tpu.memory_space<semaphore_mem>>
      %17 = tpu.memref_squeeze %16 : memref<1x!tpu.dma_semaphore, #tpu.memory_space<semaphore_mem>> -> memref<!tpu.dma_semaphore, #tpu.memory_space<semaphore_mem>>
      tpu.wait_dma2 semaphore(%17 : memref<!tpu.dma_semaphore, #tpu.memory_space<semaphore_mem>>) src(%14 : memref<16x128xf32, #tpu.memory_space<any>>) dst(%15 : memref<16x128xf32, #tpu.memory_space<any>>)
    } else {
    }
    %c2_i32 = arith.constant 2 : i32
    %7 = arith.cmpi eq, %0, %c2_i32 : i32
    %8 = arith.extui %7 : i1 to i32
    %c0_i32_2 = arith.constant 0 : i32
    %9 = arith.cmpi ne, %8, %c0_i32_2 : i32
    scf.if %9 {
      %c0_i32_3 = arith.constant 0 : i32
      %c0_i32_4 = arith.constant 0 : i32
      %c0_i32_5 = arith.constant 0 : i32
      %10 = tpu.memref_slice %arg4[%c0_i32_4, %c0_i32_5] : memref<16x128xf32, #tpu.memory_space<any>> -> memref<16x128xf32, #tpu.memory_space<any>>
      %c0_i32_6 = arith.constant 0 : i32
      %c0_i32_7 = arith.constant 0 : i32
      %11 = tpu.memref_slice %arg5[%c0_i32_6, %c0_i32_7] : memref<16x128xf32, #tpu.memory_space<any>> -> memref<16x128xf32, #tpu.memory_space<any>>
      %12 = tpu.memref_slice %arg6[%c0_i32_3] : memref<1x!tpu.dma_semaphore, #tpu.memory_space<semaphore_mem>> -> memref<1x!tpu.dma_semaphore, #tpu.memory_space<semaphore_mem>>
      %13 = tpu.memref_squeeze %12 : memref<1x!tpu.dma_semaphore, #tpu.memory_space<semaphore_mem>> -> memref<!tpu.dma_semaphore, #tpu.memory_space<semaphore_mem>>
      tpu.enqueue_dma source(%10 : memref<16x128xf32, #tpu.memory_space<any>>) target(%11 : memref<16x128xf32, #tpu.memory_space<any>>) target_semaphore(%13 : memref<!tpu.dma_semaphore, #tpu.memory_space<semaphore_mem>>)
      %c0_i32_8 = arith.constant 0 : i32
      %c0_i32_9 = arith.constant 0 : i32
      %c0_i32_10 = arith.constant 0 : i32
      %14 = tpu.memref_slice %arg4[%c0_i32_9, %c0_i32_10] : memref<16x128xf32, #tpu.memory_space<any>> -> memref<16x128xf32, #tpu.memory_space<any>>
      %c0_i32_11 = arith.constant 0 : i32
      %c0_i32_12 = arith.constant 0 : i32
      %15 = tpu.memref_slice %arg5[%c0_i32_11, %c0_i32_12] : memref<16x128xf32, #tpu.memory_space<any>> -> memref<16x128xf32, #tpu.memory_space<any>>
      %16 = tpu.memref_slice %arg6[%c0_i32_8] : memref<1x!tpu.dma_semaphore, #tpu.memory_space<semaphore_mem>> -> memref<1x!tpu.dma_semaphore, #tpu.memory_space<semaphore_mem>>
      %17 = tpu.memref_squeeze %16 : memref<1x!tpu.dma_semaphore, #tpu.memory_space<semaphore_mem>> -> memref<!tpu.dma_semaphore, #tpu.memory_space<semaphore_mem>>
      tpu.wait_dma2 semaphore(%17 : memref<!tpu.dma_semaphore, #tpu.memory_space<semaphore_mem>>) src(%14 : memref<16x128xf32, #tpu.memory_space<any>>) dst(%15 : memref<16x128xf32, #tpu.memory_space<any>>)
    } else {
    }
    return
  }
}

</mosaic_0001>

<bundles_post_ra>
// kernel: tpu_custom_call.1
= control target key start
LH: loop header
LB: loop body
LE: loop exit
PB: predicated region body
PF: predicated region fallthrough
CT: control target
= control target key end

     0   :  { %s90_s17 = smov [#allocation2]   ;;  %s91_s18 = smov 131072   ;;  %s145_s0 = inlined_call_operand.<no memory space> [shape: s32[1], index: 0, kind: input, shape index: {}]   ;;  %s146_s1 = inlined_call_operand.hbm [shape: f32[16,128], index: 1, kind: input, shape index: {}]   ;;  %s147_s2 = inlined_call_operand.hbm [shape: f32[16,128], index: 2, kind: input, shape index: {}]   ;;  %s148_s3 = inlined_call_operand.hbm [shape: f32[16,128], index: 3, kind: input, shape index: {}]   ;;  %s149_s4 = inlined_call_operand.hbm [shape: f32[16,128], index: 4, kind: output, shape index: {}]  }
   0x1   :  { %p72_p0 = scmp.eq.s32.totalorder %s145_s0, 0  ;;  %s92_s19 = smov 0  }
   0x3   :  { %64 = dma.general (%p72_p0), %s146_s1, 256, %s149_s4, %s90_s17, %s91_s18, [#allocation6], %s92_s19, 0  }
   0x4   :  { %79 = dma.done.wait (%p72_p0), [#allocation2], 256 }
   0x5   :  { %81 = vsyncadd (%p72_p0), [#allocation2], 4294967040  ;;  %p73_p1 = scmp.eq.s32.totalorder %s145_s0, 1 }
   0x7   :  { %67 = dma.general (%p73_p1), %s147_s2, 256, %s149_s4, %s90_s17, %s91_s18, [#allocation8], %s92_s19, 0  }
   0x8   :  { %83 = dma.done.wait (%p73_p1), [#allocation2], 256 }
   0x9   :  { %85 = vsyncadd (%p73_p1), [#allocation2], 4294967040  ;;  %p74_p2 = scmp.eq.s32.totalorder %s145_s0, 2 }
   0xb   :  { %70 = dma.general (%p74_p2), %s148_s3, 256, %s149_s4, %s90_s17, %s91_s18, [#allocation10], %s92_s19, 0  }
   0xc   :  { %87 = dma.done.wait (%p74_p2), [#allocation2], 256 }
   0xd   :  { %89 = vsyncadd (%p74_p2), [#allocation2], 4294967040 }
   0xe   :  { %53 = vsyncmov [#allocation2] }
  0x11   :  { %s54_s9 = vpop.sfrf %53 }
  0x12   :  { %p62_p3 = scmp.ne.s32.totalorder %s54_s9, 0 }
  0x14   :  { %58 = shalt.err (%p62_p3)  }

</bundles_post_ra>
